<compile_context>
chip_gen: v5e
topology: v5e:2x2
jax: 0.10.0
libtpu: 0.0.40
codegen_flags: <defaults>
</compile_context>

<pallas_src>
import functools

import jax
import jax.numpy as jnp
from jax.experimental import pallas as pl
from jax.experimental.pallas import tpu as pltpu

_LANES = 128
# (4096, 128) f32 = 2 MiB per input per pipeline buffer; double-buffered for
# 2 inputs -> 8 MiB, fits the default scoped-VMEM limit on v5e/v6e/v7x.
_MAX_ROW_TILE = 4096
# Below this row count a single full-array block is used (per-step overhead is
# irrelevant and splitting tiny work across cores buys nothing).
_SINGLE_BLOCK_ROWS = 1024


def _dice_partial_kernel(p_ref, t_ref, inter_ref, denom_ref, *,
                         total_rows, row_tile):
    p = p_ref[...].astype(jnp.float32)
    t = t_ref[...].astype(jnp.float32)

    def emit(pp, tt):
        # Per-block partial sums, kept lane-dense: (row_tile, 128) -> (1, 128).
        inter_ref[...] = jnp.sum(pp * tt, axis=0, keepdims=True)
        denom_ref[...] = jnp.sum(pp + tt, axis=0, keepdims=True)

    if total_rows % row_tile != 0:
        # Only the final block contains out-of-bounds rows; all other blocks
        # take the unmasked fast path (no iota/compare/select VPU work).
        i = pl.program_id(0)
        last = pl.num_programs(0) - 1

        @pl.when(i != last)
        def _():
            emit(p, t)

        @pl.when(i == last)
        def _():
            # Rows at/after `total_rows` are unspecified garbage -> zero BOTH
            # operands before any arithmetic (garbage*garbage does not cancel).
            row_ids = i * row_tile + jax.lax.broadcasted_iota(
                jnp.int32, (row_tile, _LANES), 0)
            valid = row_ids < total_rows
            emit(jnp.where(valid, p, 0.0), jnp.where(valid, t, 0.0))
    else:
        emit(p, t)


def _dice_partial_sums(pred2d, truth2d):
    rows = pred2d.shape[0]

    if rows <= _SINGLE_BLOCK_ROWS:
        # Small input: one full-array block (allowed even if rows % 8 != 0).
        row_tile = rows
    else:
        # Large input: big multiple-of-8 tile, clamped so num_blocks >= 2 and
        # both v7x TensorCores get work under the "parallel" grid axis.
        half_rows = ((pl.cdiv(rows, 2) + 7) // 8) * 8
        row_tile = min(_MAX_ROW_TILE, half_rows)
    num_blocks = pl.cdiv(rows, row_tile)

    kernel = functools.partial(
        _dice_partial_kernel, total_rows=rows, row_tile=row_tile)

    partial_shape = jax.ShapeDtypeStruct((num_blocks, _LANES), jnp.float32)
    in_spec = pl.BlockSpec((row_tile, _LANES), lambda i: (i, 0))
    out_spec = pl.BlockSpec((1, _LANES), lambda i: (i, 0))

    n_elems = rows * _LANES
    cost = pl.CostEstimate(
        flops=3 * n_elems,                                   # mul + 2 adds / elem
        bytes_accessed=2 * 4 * n_elems + 2 * 4 * num_blocks * _LANES,
        transcendentals=0,
    )

    inter_p, denom_p = pl.pallas_call(
        kernel,
        out_shape=(partial_shape, partial_shape),
        grid_spec=pltpu.PrefetchScalarGridSpec(
            num_scalar_prefetch=0,
            grid=(num_blocks,),
            in_specs=[in_spec, in_spec],
            out_specs=[out_spec, out_spec],
        ),
        compiler_params=pltpu.CompilerParams(
            # Each block writes its own output slice -> safe to shard across
            # TensorCores (used on v7x megacore; harmless elsewhere).
            dimension_semantics=("parallel",),
        ),
        cost_estimate=cost,
    )(pred2d, truth2d)

    # Tiny (num_blocks, 128) arrays -> final reduction in plain JAX.
    return jnp.sum(inter_p), jnp.sum(denom_p)


def dice_loss(inputs, target):
    """Pallas implementation of DiceLoss.forward (returns a scalar)."""
    pred = inputs.reshape(-1)
    truth = target.reshape(-1)
    n = pred.shape[0]

    main = (n // _LANES) * _LANES      # lane-aligned prefix handled by kernel
    tail = n - main                    # < 128 leftover elements (wrapper sums)

    inter = jnp.zeros((), jnp.float32)
    denom = jnp.zeros((), jnp.float32)

    if main:
        if main == n:
            p_main, t_main = pred, truth          # copy-free reshape path
        else:
            p_main, t_main = pred[:main], truth[:main]
        rows = main // _LANES
        i_k, d_k = _dice_partial_sums(
            p_main.reshape(rows, _LANES), t_main.reshape(rows, _LANES))
        inter = inter + i_k
        denom = denom + d_k

    if tail:
        p_tail = pred[main:].astype(jnp.float32)
        t_tail = truth[main:].astype(jnp.float32)
        inter = inter + jnp.sum(p_tail * t_tail)
        denom = denom + jnp.sum(p_tail) + jnp.sum(t_tail)

    dice_coef = (2.0 * inter + 1.0) / (denom + 1.0)
    return 1.0 - dice_coef


def _ref_loss(x, y):
    p = x.reshape(-1).astype(jnp.float32)
    t = y.reshape(-1).astype(jnp.float32)
    return 1.0 - (2.0 * jnp.sum(p * t) + 1.0) / (jnp.sum(p) + jnp.sum(t) + 1.0)


if __name__ == "__main__":
    key = jax.random.PRNGKey(0)
    k1, k2 = jax.random.split(key)

    # Shapes consistent with a segmentation-style forward: [N, C, H, W].
    x = jax.random.uniform(k1, (2, 4, 16, 16), dtype=jnp.float32)            # predictions
    y = (jax.random.uniform(k2, (2, 4, 16, 16)) > 0.5).astype(jnp.float32)   # binary mask
    loss = dice_loss(x, y)
    jax.block_until_ready(loss)
    assert jnp.allclose(loss, _ref_loss(x, y), atol=1e-5, rtol=1e-5), loss

    # Lane-ragged shape -> exercises the wrapper tail path (no jnp.pad).
    x2 = jax.random.uniform(k1, (3, 5, 17, 19), dtype=jnp.float32)
    y2 = (jax.random.uniform(k2, (3, 5, 17, 19)) > 0.5).astype(jnp.float32)
    loss2 = dice_loss(x2, y2)
    jax.block_until_ready(loss2)
    assert jnp.allclose(loss2, _ref_loss(x2, y2), atol=1e-5, rtol=1e-5), loss2

    # Multi-block + ragged final row-tile + tail: 1028 rows of 128 plus 7.
    n3 = 1028 * _LANES + 7
    x3 = jax.random.uniform(k1, (n3,), dtype=jnp.float32)
    y3 = (jax.random.uniform(k2, (n3,)) > 0.5).astype(jnp.float32)
    loss3 = dice_loss(x3, y3)
    jax.block_until_ready(loss3)
    assert jnp.allclose(loss3, _ref_loss(x3, y3), atol=1e-4, rtol=1e-4), loss3

    print("KERNEL_OK")
</pallas_src>

<mosaic_0001>
module attributes {stable_mosaic.version = 11 : i64} {
  func.func @_dice_partial_kernel(%arg0: i32, %arg1: memref<16x128xf32, #tpu.memory_space<vmem>>, %arg2: memref<16x128xf32, #tpu.memory_space<vmem>>, %arg3: memref<1x128xf32, #tpu.memory_space<vmem>>, %arg4: memref<1x128xf32, #tpu.memory_space<vmem>>) attributes {dimension_semantics = [#tpu.dimension_semantics<parallel>], iteration_bounds = array<i64: 1>, scalar_prefetch = 0 : i64, scratch_operands = 0 : i64, tpu.core_type = #tpu.core_type<tc>, window_params = [{transform_indices = @transform_0, window_bounds = array<i64: 16, 128>}, {transform_indices = @transform_1, window_bounds = array<i64: 16, 128>}, {transform_indices = @transform_2, window_bounds = array<i64: 1, 128>}, {transform_indices = @transform_3, window_bounds = array<i64: 1, 128>}]} {
    %c0 = arith.constant 0 : index
    %c0_0 = arith.constant 0 : index
    %0 = vector.load %arg1[%c0, %c0_0] : memref<16x128xf32, #tpu.memory_space<vmem>>, vector<16x128xf32>
    %c0_1 = arith.constant 0 : index
    %c0_2 = arith.constant 0 : index
    %1 = vector.load %arg2[%c0_1, %c0_2] : memref<16x128xf32, #tpu.memory_space<vmem>>, vector<16x128xf32>
    %2 = arith.mulf %0, %1 : vector<16x128xf32>
    %cst = arith.constant dense<0.000000e+00> : vector<128xf32>
    %3 = vector.multi_reduction <add>, %2, %cst [0] : vector<16x128xf32> to vector<128xf32>
    %4 = vector.shape_cast %3 : vector<128xf32> to vector<1x128xf32>
    %c0_3 = arith.constant 0 : index
    %c0_4 = arith.constant 0 : index
    %5 = vector.load %arg3[%c0_3, %c0_4] : memref<1x128xf32, #tpu.memory_space<vmem>>, vector<1x128xf32>
    tpu.vector_store %arg3[%c0_3, %c0_4], %4 {strides = array<i32>} : memref<1x128xf32, #tpu.memory_space<vmem>>, vector<1x128xf32>,
    %6 = arith.addf %0, %1 : vector<16x128xf32>
    %cst_5 = arith.constant dense<0.000000e+00> : vector<128xf32>
    %7 = vector.multi_reduction <add>, %6, %cst_5 [0] : vector<16x128xf32> to vector<128xf32>
    %8 = vector.shape_cast %7 : vector<128xf32> to vector<1x128xf32>
    %c0_6 = arith.constant 0 : index
    %c0_7 = arith.constant 0 : index
    %9 = vector.load %arg4[%c0_6, %c0_7] : memref<1x128xf32, #tpu.memory_space<vmem>>, vector<1x128xf32>
    tpu.vector_store %arg4[%c0_6, %c0_7], %8 {strides = array<i32>} : memref<1x128xf32, #tpu.memory_space<vmem>>, vector<1x128xf32>,
    return
  }
  func.func @transform_0(%arg0: i32) -> (i32, i32) {
    %c0_i32 = arith.constant 0 : i32
    %c0_i32_0 = arith.constant 0 : i32
    return %arg0, %c0_i32 : i32, i32
  }
  func.func @transform_1(%arg0: i32) -> (i32, i32) {
    %c0_i32 = arith.constant 0 : i32
    %c0_i32_0 = arith.constant 0 : i32
    return %arg0, %c0_i32 : i32, i32
  }
  func.func @transform_2(%arg0: i32) -> (i32, i32) {
    %c0_i32 = arith.constant 0 : i32
    %c0_i32_0 = arith.constant 0 : i32
    return %arg0, %c0_i32 : i32, i32
  }
  func.func @transform_3(%arg0: i32) -> (i32, i32) {
    %c0_i32 = arith.constant 0 : i32
    %c0_i32_0 = arith.constant 0 : i32
    return %arg0, %c0_i32 : i32, i32
  }
}

</mosaic_0001>

<bundles_post_ra>
// kernel: tpu_custom_call.1
= control target key start
LH: loop header
LB: loop body
LE: loop exit
PB: predicated region body
PF: predicated region fallthrough
CT: control target
= control target key end

     0   :  { %9 = vsyncpa [#allocation3], 0  ;;  %s253_s0 = inlined_call_operand.hbm [shape: f32[16,128], index: 0, kind: input, shape index: {}]   ;;  %s254_s1 = inlined_call_operand.hbm [shape: f32[16,128], index: 1, kind: input, shape index: {}]   ;;  %s255_s2 = inlined_call_operand.hbm [shape: f32[1,128], index: 2, kind: output, shape index: {0}]   ;;  %s256_s3 = inlined_call_operand.hbm [shape: f32[1,128], index: 3, kind: output, shape index: {1}]  }
   0x1   :  { %10 = vsyncpa [#allocation6], 0 }
   0x2   :  { %11 = vsyncpa [#allocation4], 0 }
   0x3   :  { %12 = vsyncpa [#allocation9], 0  ;;  %s17_s14 = sshll.u32 %s253_s0, 4  ;;  %s215_s15 = smov [#allocation2]   ;;  %s18_s14 = int_to_ptr.hbm [resolvable:$true] %s17_s14 }
   0x4   :  { %s19_s16 = sshll.u32 %s215_s15, 4  ;;  %s30_s19 = sshll.u32 %s254_s1, 4  ;;  %s20_s16 = int_to_ptr.vmem [resolvable:$true] %s19_s16  ;;  %s31_s19 = int_to_ptr.hbm [resolvable:$true] %s30_s19 }
   0x5   :  { %s216_s20 = smov 128   ;;  %s217_s21 = smov 8  }
   0x6   :  { %25 = dma.hbm_to_vmem [thread:$0]  %s18_s14, 256, %s20_s16, [#allocation3], %s216_s20, %s216_s20, %s217_s21  }
   0x7   :  { %s218_s22 = smov [#allocation5]  }
   0x8   :  { %s32_s23 = sshll.u32 %s218_s22, 4  ;;  %s33_s23 = int_to_ptr.vmem [resolvable:$true] %s32_s23 }
   0x9   :  { %38 = dma.hbm_to_vmem [thread:$0]  %s31_s19, 256, %s33_s23, [#allocation6], %s216_s20, %s216_s20, %s217_s21  }
   0xa   :  { %207 = dma.done.wait [#allocation3], 256  }
   0xb   :  { %208 = vsyncadd [#allocation3], 4294967040 }
   0xc   :  { %209 = dma.done.wait [#allocation6], 256  }
   0xd   :  { %210 = vsyncadd [#allocation6], 4294967040  ;;  %v47_v0 = vld [vmem:[#allocation2] sm:$0xff]  ;;  %v48_v1 = vld [vmem:[#allocation2 + $0x8] sm:$0xff]  ;;  %s219_s0 = smov [#allocation7]   ;;  %s78_s26 = sshll.u32 %s255_s2, 4  ;;  %s79_s26 = int_to_ptr.hbm [resolvable:$true] %s78_s26 }
   0xe   :  { %v49_v2 = vld [vmem:[#allocation5] sm:$0xff]  ;;  %v50_v3 = vld [vmem:[#allocation5 + $0x8] sm:$0xff]  ;;  %s76_s1 = sshll.u32 %s219_s0, 4  ;;  %s220_s27 = smov [#allocation8]   ;;  %s77_s1 = int_to_ptr.vmem [resolvable:$true] %s76_s1 }
   0xf   :  { %v51_v4 = vmul.f32 %v49_v2, %v47_v0  ;;  %v61_v5 = vadd.f32 %v49_v2, %v47_v0  ;;  %v52_v6 = vmul.f32 %v50_v3, %v48_v1  ;;  %v62_v7 = vadd.f32 %v50_v3, %v48_v1  ;;  %s87_s28 = sshll.u32 %s220_s27, 4  ;;  %s89_s4 = sshll.u32 %s256_s3, 4  ;;  %s88_s28 = int_to_ptr.vmem [resolvable:$true] %s87_s28  ;;  %s90_s4 = int_to_ptr.hbm [resolvable:$true] %s89_s4 }
  0x11   :  { %v53_v8 = vadd.f32 %v52_v6, %v51_v4  ;;  %v63_v9 = vadd.f32 %v62_v7, %v61_v5 }
  0x13   :  { %v54_v10 = vrot.slane %v53_v8, 4  ;;  %v64_v11 = vrot.slane %v63_v9, 4 }
  0x15   :  { %v55_v12 = vadd.f32 %v54_v10, %v53_v8  ;;  %v65_v13 = vadd.f32 %v64_v11, %v63_v9 }
  0x17   :  { %v56_v14 = vrot.slane %v55_v12, 2  ;;  %v66_v15 = vrot.slane %v65_v13, 2 }
  0x19   :  { %v57_v16 = vadd.f32 %v56_v14, %v55_v12  ;;  %v67_v17 = vadd.f32 %v66_v15, %v65_v13 }
  0x1b   :  { %v58_v18 = vrot.slane %v57_v16, 1  ;;  %v68_v19 = vrot.slane %v67_v17, 1 }
  0x1d   :  { %v59_v20 = vadd.f32 %v58_v18, %v57_v16  ;;  %v69_v21 = vadd.f32 %v68_v19, %v67_v17 }
  0x1f   :  { %60 = vst [vmem:[#allocation7] sm:$0x1] %v59_v20 }
  0x20   :  { %70 = vst [vmem:[#allocation8] sm:$0x1] %v69_v21  ;;  %81 = dma.vmem_to_hbm [thread:$0]  %s77_s1, 16, %s79_s26, [#allocation4]  }
  0x21   :  { %92 = dma.vmem_to_hbm [thread:$0]  %s88_s28, 16, %s90_s4, [#allocation9]  }
  0x22   :  { %211 = dma.done.wait [#allocation4], 16  }
  0x23   :  { %212 = vsyncadd [#allocation4], 4294967280 }
  0x24   :  { %213 = dma.done.wait [#allocation9], 16  }
  0x25   :  { %214 = vsyncadd [#allocation9], 4294967280 }
  0x26   :  { %101 = vsyncpa [#allocation3], 1 }
  0x27   :  { %102 = vsyncpa [#allocation6], 1 }
  0x28   :  { %103 = vsyncpa [#allocation4], 1 }
  0x29   :  { %104 = vsyncpa [#allocation9], 1 }

</bundles_post_ra>
